<compile_context>
chip_gen: v6e
topology: v6e:2x2x1
jax: 0.10.0
libtpu: 0.0.40
codegen_flags: <defaults>
</compile_context>

<pallas_src>
import functools
import math

import jax
import jax.numpy as jnp
from jax.experimental import pallas as pl
from jax.experimental.pallas import tpu as pltpu


# ---------------------------------------------------------------------------
# Generation-aware sizing
# ---------------------------------------------------------------------------

def _int_attr(obj, names):
    for name in names:
        v = getattr(obj, name, None)
        if v is None:
            continue
        try:
            v = int(v)
        except (TypeError, ValueError):
            continue
        if v > 0:
            return v
    return None


@functools.lru_cache(maxsize=None)
def _chip_params():
    """Returns (target_block_bytes, vmem_limit_bytes, tensorcores_per_chip)."""
    target, vmem_limit, n_tc = 2 * 1024 * 1024, 32 * 1024 * 1024, 1  # safe default
    get_info = getattr(pltpu, "get_tpu_info", None)
    if get_info is None:
        return target, vmem_limit, n_tc
    try:
        info = get_info()
    except Exception:
        return target, vmem_limit, n_tc
    vmem = _int_attr(info, ("vmem_capacity_bytes", "vmem_size_bytes", "vmem_bytes"))
    cores = _int_attr(info, ("num_tensorcores", "tensorcores_per_chip",
                             "num_cores", "cores_per_chip", "core_count"))
    if cores is not None:
        n_tc = cores
    if vmem is not None and vmem <= 80 * 1024 * 1024:
        # v7x-class: 64 MiB VMEM/TC, ~3.2 TB/s HBM, 2 TCs/chip.  Larger blocks
        # amortize the fixed ~0.35us/step overhead; 48 MiB scoped limit leaves
        # headroom inside the 64 MiB physical VMEM.
        target, vmem_limit, n_tc = 6 * 1024 * 1024, 48 * 1024 * 1024, max(n_tc, 2)
    elif vmem is not None:
        # v5e/v6e-class: 128 MiB VMEM, single TC.  ~4 MiB blocks sit at the
        # HBM roofline; 48 MiB scoped limit is trivially safe.
        target, vmem_limit = 4 * 1024 * 1024, 48 * 1024 * 1024
    return target, vmem_limit, n_tc


def _sublane_multiple(itemsize):
    # f32 tiles are (8,128); bf16 pack as (16,128); 8-bit as (32,128).
    return max(8, 32 // max(1, int(itemsize)))


def _choose_block_rows(n_rows, width, itemsize, target_bytes, vmem_limit, n_tc):
    """Rows per block for the row kernels: hit the DMA byte target, stay inside
    the VMEM budget (I/O double-buffers + f32 temporaries), respect the dtype's
    sublane granularity, and guarantee >=2 grid steps per TC on multi-TC parts."""
    sub = _sublane_multiple(itemsize)
    row_bytes = width * itemsize
    br = max(sub, target_bytes // max(1, row_bytes))
    # 2x(in)+2x(out) buffers at the input dtype plus ~3 block-sized f32 temps.
    per_row_vmem = width * (4 * itemsize + 3 * 4)
    br = min(br, max(sub, int(0.75 * vmem_limit) // max(1, per_row_vmem)))
    if n_tc > 1:
        # At least 2 pipelined steps per TensorCore (>= 2*n_tc blocks) so each
        # core keeps input DMA / compute / output DMA overlapped.
        br = min(br, max(sub, n_rows // (2 * n_tc)))
    if br >= n_rows:
        return n_rows                    # single full block (always layout-legal)
    return max(sub, (br // sub) * sub)


def _choose_cf_block(batch, c, hw, itemsize, target_bytes, vmem_limit, n_tc):
    """(batch_block, hw_tile) for the channels_first kernel."""
    vmem_budget = int(0.75 * vmem_limit)
    per_elem_vmem = 4 * itemsize + 3 * 4       # I/O double-buffers + f32 temps
    # H*W lane tile: multiple of 128 when tiling, otherwise the full dim.
    if hw <= 128:
        tile = hw
    else:
        t = min(target_bytes // max(1, c * itemsize),
                vmem_budget // max(1, c * per_elem_vmem))
        tile = max(128, min(hw, (max(128, t) // 128) * 128))
        if n_tc > 1 and batch < 2 * n_tc:
            # Need >= 2*n_tc grid steps; split along H*W what the batch axis
            # cannot supply.
            splits = pl.cdiv(2 * n_tc, batch)
            tile = max(128, min(tile, (hw // splits // 128) * 128))
        if tile >= hw:
            tile = hw
    # Batch block: amortize the fixed per-step overhead when one image's
    # (C, tile) slab is far below the byte target.
    per_image = c * tile * itemsize
    per_image_vmem = c * tile * per_elem_vmem
    bb = max(1, min(batch, target_bytes // max(1, per_image)))
    bb = min(bb, max(1, vmem_budget // max(1, per_image_vmem)))
    if n_tc > 1:
        while bb > 1 and pl.cdiv(batch, bb) * pl.cdiv(hw, tile) < 2 * n_tc:
            bb -= 1
    return bb, tile


# ---------------------------------------------------------------------------
# Kernels
# ---------------------------------------------------------------------------

def _ln_rows_kernel(x_ref, w_ref, b_ref, o_ref, *, eps):
    """LayerNorm over the last axis of a (rows, C) block (C on lanes)."""
    x = x_ref[...].astype(jnp.float32)
    mean = jnp.mean(x, axis=-1, keepdims=True)
    xc = x - mean
    var = jnp.mean(xc * xc, axis=-1, keepdims=True)          # biased variance
    y = xc * jax.lax.rsqrt(var + eps)
    o_ref[...] = (y * w_ref[...] + b_ref[...]).astype(o_ref.dtype)


def _ln_packed_kernel(x_ref, w_ref, b_ref, o_ref, *, eps, c, g):
    """LayerNorm for small C: g original rows lane-packed per 128-lane row.

    Block is (rows, g*C); lane segment s = lanes [s*C, (s+1)*C) is one original
    row.  HBM loads/stores are lane-dense; per-segment reductions are a tiny
    static unroll.
    """
    x = x_ref[...].astype(jnp.float32)                        # (rows, g*C)
    outs = []
    for s in range(g):                                        # static unroll
        xs = x[:, s * c:(s + 1) * c]
        mean = jnp.mean(xs, axis=-1, keepdims=True)
        xc = xs - mean
        var = jnp.mean(xc * xc, axis=-1, keepdims=True)       # biased variance
        outs.append(xc * jax.lax.rsqrt(var + eps))
    y = jnp.concatenate(outs, axis=-1)                        # (rows, g*C)
    o_ref[...] = (y * w_ref[...] + b_ref[...]).astype(o_ref.dtype)
    # TODO(synk): if a bundle dump ever shows this compute un-hidden under DMA,
    # replace the per-segment XLU reductions with two tiny MXU matmuls.


def _ln_cf_kernel(x_ref, w_ref, b_ref, o_ref, *, eps):
    """channels_first LayerNorm on a (bb, C, T) block: reduce over C (sublanes)."""
    x = x_ref[...].astype(jnp.float32)                        # (bb, C, T)
    mean = jnp.mean(x, axis=1, keepdims=True)                 # (bb, 1, T)
    xc = x - mean
    var = jnp.mean(xc * xc, axis=1, keepdims=True)            # biased variance
    y = xc * jax.lax.rsqrt(var + eps)
    o_ref[...] = (y * w_ref[...] + b_ref[...]).astype(o_ref.dtype)


# ---------------------------------------------------------------------------
# Wrappers
# ---------------------------------------------------------------------------

def _ln_rows(x2d, w_row, b_row, kernel):
    """Run a (rows, width) row-LayerNorm kernel; ragged last block is masked."""
    rows, width = x2d.shape
    target, vmem_limit, n_tc = _chip_params()
    itemsize = x2d.dtype.itemsize
    block_rows = _choose_block_rows(rows, width, itemsize, target, vmem_limit, n_tc)
    grid = (pl.cdiv(rows, block_rows),)
    return pl.pallas_call(
        kernel,
        out_shape=jax.ShapeDtypeStruct((rows, width), x2d.dtype),
        grid_spec=pltpu.PrefetchScalarGridSpec(
            num_scalar_prefetch=0,
            grid=grid,
            in_specs=[
                pl.BlockSpec((block_rows, width), lambda i: (i, 0)),
                pl.BlockSpec((1, width), lambda i: (0, 0)),
                pl.BlockSpec((1, width), lambda i: (0, 0)),
            ],
            out_specs=pl.BlockSpec((block_rows, width), lambda i: (i, 0)),
        ),
        compiler_params=pltpu.CompilerParams(
            dimension_semantics=("parallel",),
            vmem_limit_bytes=vmem_limit),
    )(x2d, w_row, b_row)


def _layer_norm_channels_last(x, weight, bias, eps):
    c = x.shape[-1]
    n = math.prod(x.shape[:-1])
    x2d = x.reshape(n, c)
    w32 = weight.astype(jnp.float32)
    b32 = bias.astype(jnp.float32)
    plain_kernel = functools.partial(_ln_rows_kernel, eps=eps)

    g = 128 // c if (8 <= c < 128 and 128 % c == 0) else 1
    if g > 1:
        gc = g * c
        wp = jnp.tile(w32, g).reshape(1, gc)
        bp = jnp.tile(b32, g).reshape(1, gc)
        packed_kernel = functools.partial(_ln_packed_kernel, eps=eps, c=c, g=g)
        n_main = (n // g) * g
        if n_main == n:
            out = _ln_rows(x2d.reshape(n // g, gc), wp, bp, packed_kernel)
            out = out.reshape(n, c)
        elif n_main == 0:
            out = _ln_rows(x2d, w32.reshape(1, c), b32.reshape(1, c), plain_kernel)
        else:
            # Keep the lane-dense packed path for the bulk; only the < g-row
            # tail runs the plain kernel (one output-sized concat when ragged).
            main = _ln_rows(
                jax.lax.slice_in_dim(x2d, 0, n_main, axis=0).reshape(n_main // g, gc),
                wp, bp, packed_kernel).reshape(n_main, c)
            tail = _ln_rows(
                jax.lax.slice_in_dim(x2d, n_main, n, axis=0),
                w32.reshape(1, c), b32.reshape(1, c), plain_kernel)
            out = jnp.concatenate([main, tail], axis=0)
    else:
        out = _ln_rows(x2d, w32.reshape(1, c), b32.reshape(1, c), plain_kernel)
    return out.reshape(x.shape)


def _layer_norm_channels_first(x, weight, bias, eps):
    if x.ndim < 3:
        raise NotImplementedError("channels_first expects (B, C, *spatial)")
    b, c = x.shape[0], x.shape[1]
    hw = math.prod(x.shape[2:])
    x3 = x.reshape(b, c, hw)                                  # free reshape, no transpose
    w3 = weight.astype(jnp.float32).reshape(1, c, 1)
    b3 = bias.astype(jnp.float32).reshape(1, c, 1)
    target, vmem_limit, n_tc = _chip_params()
    itemsize = x.dtype.itemsize
    bb, tile = _choose_cf_block(b, c, hw, itemsize, target, vmem_limit, n_tc)
    grid = (pl.cdiv(b, bb), pl.cdiv(hw, tile))
    out = pl.pallas_call(
        functools.partial(_ln_cf_kernel, eps=eps),
        out_shape=jax.ShapeDtypeStruct((b, c, hw), x.dtype),
        grid_spec=pltpu.PrefetchScalarGridSpec(
            num_scalar_prefetch=0,
            grid=grid,
            in_specs=[
                pl.BlockSpec((bb, c, tile), lambda i, j: (i, 0, j)),
                pl.BlockSpec((1, c, 1), lambda i, j: (0, 0, 0)),
                pl.BlockSpec((1, c, 1), lambda i, j: (0, 0, 0)),
            ],
            out_specs=pl.BlockSpec((bb, c, tile), lambda i, j: (i, 0, j)),
        ),
        compiler_params=pltpu.CompilerParams(
            dimension_semantics=("parallel", "parallel"),
            vmem_limit_bytes=vmem_limit),
    )(x3, w3, b3)
    return out.reshape(x.shape)


def layer_norm(x, weight, bias, eps=1e-6, data_format="channels_last"):
    """Matches the PyTorch LayerNorm module's forward for both data formats."""
    if data_format == "channels_last":
        return _layer_norm_channels_last(x, weight, bias, eps)
    elif data_format == "channels_first":
        return _layer_norm_channels_first(x, weight, bias, eps)
    else:
        raise NotImplementedError(data_format)


# ---------------------------------------------------------------------------
# References + self-test
# ---------------------------------------------------------------------------

def _reference_channels_first(x, weight, bias, eps):
    u = jnp.mean(x, axis=1, keepdims=True)
    s = jnp.mean((x - u) ** 2, axis=1, keepdims=True)
    xn = (x - u) / jnp.sqrt(s + eps)
    wshape = (1, -1) + (1,) * (x.ndim - 2)
    return weight.reshape(wshape) * xn + bias.reshape(wshape)


def _reference_channels_last(x, weight, bias, eps):
    u = jnp.mean(x, axis=-1, keepdims=True)
    s = jnp.mean((x - u) ** 2, axis=-1, keepdims=True)
    xn = (x - u) / jnp.sqrt(s + eps)
    return xn * weight + bias


if __name__ == "__main__":
    key = jax.random.PRNGKey(0)
    keys = jax.random.split(key, 10)
    eps = 1e-6

    def check(y, ref, atol=3e-5, rtol=1e-5):
        y = jax.block_until_ready(y)
        assert jnp.allclose(jnp.asarray(y, jnp.float32),
                            jnp.asarray(ref, jnp.float32), atol=atol, rtol=rtol)

    # --- C=32: packed lane-dense path -------------------------------------
    C = 32
    weight = 1.0 + 0.1 * jax.random.normal(keys[0], (C,), dtype=jnp.float32)
    bias = 0.1 * jax.random.normal(keys[1], (C,), dtype=jnp.float32)

    # channels_first (NCHW), no transposes, batch-blocked
    x_cf = jax.random.normal(keys[2], (2, C, 8, 8), dtype=jnp.float32)
    check(layer_norm(x_cf, weight, bias, eps, data_format="channels_first"),
          _reference_channels_first(x_cf, weight, bias, eps))

    # channels_last (NHWC), packed (g = 4 rows per 128-lane row)
    x_cl = jax.random.normal(keys[3], (2, 8, 8, C), dtype=jnp.float32)
    check(layer_norm(x_cl, weight, bias, eps, data_format="channels_last"),
          _reference_channels_last(x_cl, weight, bias, eps))

    # channels_last, ragged N (n % g != 0): packed bulk + tiny plain tail
    x_rag = jax.random.normal(keys[4], (1, 3, 7, C), dtype=jnp.float32)
    check(layer_norm(x_rag, weight, bias, eps, data_format="channels_last"),
          _reference_channels_last(x_rag, weight, bias, eps))

    # channels_first with non-multiple-of-128 spatial extent
    x_cfr = jax.random.normal(keys[5], (1, C, 16, 20), dtype=jnp.float32)
    check(layer_norm(x_cfr, weight, bias, eps, data_format="channels_first"),
          _reference_channels_first(x_cfr, weight, bias, eps))

    # channels_last bf16 input (exercise dtype-aware block math / lowering)
    x_bf = jax.random.normal(keys[6], (2, 4, 4, C), dtype=jnp.float32)
    y_bf = layer_norm(x_bf.astype(jnp.bfloat16), weight, bias, eps,
                      data_format="channels_last")
    check(y_bf, _reference_channels_last(x_bf, weight, bias, eps),
          atol=3e-2, rtol=3e-2)

    # --- C=128: plain (already lane-dense) path ----------------------------
    C2 = 128
    weight2 = 1.0 + 0.1 * jax.random.normal(keys[7], (C2,), dtype=jnp.float32)
    bias2 = 0.1 * jax.random.normal(keys[8], (C2,), dtype=jnp.float32)
    x_big = jax.random.normal(keys[9], (2, 4, 4, C2), dtype=jnp.float32)
    check(layer_norm(x_big, weight2, bias2, eps, data_format="channels_last"),
          _reference_channels_last(x_big, weight2, bias2, eps))

    # --- C=48: C does not divide 128 -> plain row kernel --------------------
    C3 = 48
    weight3 = 1.0 + 0.1 * jax.random.normal(keys[0], (C3,), dtype=jnp.float32)
    bias3 = 0.1 * jax.random.normal(keys[1], (C3,), dtype=jnp.float32)
    x_odd = jax.random.normal(keys[2], (2, 3, 5, C3), dtype=jnp.float32)
    check(layer_norm(x_odd, weight3, bias3, eps, data_format="channels_last"),
          _reference_channels_last(x_odd, weight3, bias3, eps))

    print("KERNEL_OK")
</pallas_src>

<mosaic_0001>
module attributes {stable_mosaic.version = 11 : i64} {
  func.func @_ln_cf_kernel(%arg0: i32, %arg1: i32, %arg2: memref<2x32x64xf32, #tpu.memory_space<vmem>>, %arg3: memref<1x32x1xf32, #tpu.memory_space<vmem>>, %arg4: memref<1x32x1xf32, #tpu.memory_space<vmem>>, %arg5: memref<2x32x64xf32, #tpu.memory_space<vmem>>) attributes {dimension_semantics = [#tpu.dimension_semantics<parallel>, #tpu.dimension_semantics<parallel>], iteration_bounds = array<i64: 1, 1>, scalar_prefetch = 0 : i64, scratch_operands = 0 : i64, tpu.core_type = #tpu.core_type<tc>, window_params = [{transform_indices = @transform_0, window_bounds = array<i64: 2, 32, 64>}, {pipeline_mode = #tpu.pipeline_mode<synchronous>, transform_indices = @transform_1, window_bounds = array<i64: 1, 32, 1>}, {pipeline_mode = #tpu.pipeline_mode<synchronous>, transform_indices = @transform_2, window_bounds = array<i64: 1, 32, 1>}, {transform_indices = @transform_3, window_bounds = array<i64: 2, 32, 64>}]} {
    %c0 = arith.constant 0 : index
    %c0_0 = arith.constant 0 : index
    %c0_1 = arith.constant 0 : index
    %0 = vector.load %arg2[%c0, %c0_0, %c0_1] : memref<2x32x64xf32, #tpu.memory_space<vmem>>, vector<2x32x64xf32>
    %cst = arith.constant dense<0.000000e+00> : vector<2x64xf32>
    %1 = vector.multi_reduction <add>, %0, %cst [1] : vector<2x32x64xf32> to vector<2x64xf32>
    %2 = vector.shape_cast %1 : vector<2x64xf32> to vector<2x1x64xf32>
    %cst_2 = arith.constant 3.200000e+01 : f32
    %3 = vector.broadcast %cst_2 : f32 to vector<2x1x64xf32>
    %4 = arith.divf %2, %3 : vector<2x1x64xf32>
    %5 = vector.broadcast %4 : vector<2x1x64xf32> to vector<2x32x64xf32>
    %6 = arith.subf %0, %5 : vector<2x32x64xf32>
    %7 = arith.mulf %6, %6 : vector<2x32x64xf32>
    %cst_3 = arith.constant dense<0.000000e+00> : vector<2x64xf32>
    %8 = vector.multi_reduction <add>, %7, %cst_3 [1] : vector<2x32x64xf32> to vector<2x64xf32>
    %9 = vector.shape_cast %8 : vector<2x64xf32> to vector<2x1x64xf32>
    %cst_4 = arith.constant 3.200000e+01 : f32
    %10 = vector.broadcast %cst_4 : f32 to vector<2x1x64xf32>
    %11 = arith.divf %9, %10 : vector<2x1x64xf32>
    %cst_5 = arith.constant 9.99999997E-7 : f32
    %12 = vector.broadcast %cst_5 : f32 to vector<2x1x64xf32>
    %13 = arith.addf %11, %12 : vector<2x1x64xf32>
    %14 = math.rsqrt %13 : vector<2x1x64xf32>
    %15 = vector.broadcast %14 : vector<2x1x64xf32> to vector<2x32x64xf32>
    %16 = arith.mulf %6, %15 : vector<2x32x64xf32>
    %c0_6 = arith.constant 0 : index
    %c0_7 = arith.constant 0 : index
    %c0_8 = arith.constant 0 : index
    %17 = vector.load %arg3[%c0_6, %c0_7, %c0_8] : memref<1x32x1xf32, #tpu.memory_space<vmem>>, vector<1x32x1xf32>
    %18 = vector.broadcast %17 : vector<1x32x1xf32> to vector<2x32x64xf32>
    %19 = arith.mulf %16, %18 : vector<2x32x64xf32>
    %c0_9 = arith.constant 0 : index
    %c0_10 = arith.constant 0 : index
    %c0_11 = arith.constant 0 : index
    %20 = vector.load %arg4[%c0_9, %c0_10, %c0_11] : memref<1x32x1xf32, #tpu.memory_space<vmem>>, vector<1x32x1xf32>
    %21 = vector.broadcast %20 : vector<1x32x1xf32> to vector<2x32x64xf32>
    %22 = arith.addf %19, %21 : vector<2x32x64xf32>
    %c0_12 = arith.constant 0 : index
    %c0_13 = arith.constant 0 : index
    %c0_14 = arith.constant 0 : index
    %23 = vector.load %arg5[%c0_12, %c0_13, %c0_14] : memref<2x32x64xf32, #tpu.memory_space<vmem>>, vector<2x32x64xf32>
    tpu.vector_store %arg5[%c0_12, %c0_13, %c0_14], %22 {strides = array<i32>} : memref<2x32x64xf32, #tpu.memory_space<vmem>>, vector<2x32x64xf32>,
    return
  }
  func.func @transform_0(%arg0: i32, %arg1: i32) -> (i32, i32, i32) {
    %c0_i32 = arith.constant 0 : i32
    %c0_i32_0 = arith.constant 0 : i32
    return %arg0, %c0_i32, %arg1 : i32, i32, i32
  }
  func.func @transform_1(%arg0: i32, %arg1: i32) -> (i32, i32, i32) {
    %c0_i32 = arith.constant 0 : i32
    %c0_i32_0 = arith.constant 0 : i32
    %c0_i32_1 = arith.constant 0 : i32
    %c0_i32_2 = arith.constant 0 : i32
    return %c0_i32, %c0_i32_0, %c0_i32_1 : i32, i32, i32
  }
  func.func @transform_2(%arg0: i32, %arg1: i32) -> (i32, i32, i32) {
    %c0_i32 = arith.constant 0 : i32
    %c0_i32_0 = arith.constant 0 : i32
    %c0_i32_1 = arith.constant 0 : i32
    %c0_i32_2 = arith.constant 0 : i32
    return %c0_i32, %c0_i32_0, %c0_i32_1 : i32, i32, i32
  }
  func.func @transform_3(%arg0: i32, %arg1: i32) -> (i32, i32, i32) {
    %c0_i32 = arith.constant 0 : i32
    %c0_i32_0 = arith.constant 0 : i32
    return %arg0, %c0_i32, %arg1 : i32, i32, i32
  }
}

</mosaic_0001>

<bundles_post_ra>
// kernel: tpu_custom_call.1
= control target key start
LH: loop header
LB: loop body
LE: loop exit
PB: predicated region body
PF: predicated region fallthrough
CT: control target
= control target key end

     0   :  { %v229_v2 = vmov 0   ;;  %s328_s0 = inlined_call_operand.vmem [shape: f32[2,32,64], index: 0, kind: input, shape index: {}]   ;;  %s329_s1 = inlined_call_operand.vmem [shape: f32[1,32,1], index: 1, kind: input, shape index: {}]   ;;  %s330_s2 = inlined_call_operand.vmem [shape: f32[1,32,1], index: 2, kind: input, shape index: {}]   ;;  %s331_s3 = inlined_call_operand.hbm [shape: f32[2,32,64], index: 3, kind: output, shape index: {}]  }
   0x1   :  { %v111_v0 = vld [vmem:[%s329_s1 + $0x10] sm:$0xff]  ;;  %v109_v1 = vld [vmem:[%s329_s1] sm:$0xff]  ;;  %202 = vset.pattern.permute.xlu1 %v229_v2  ;;  %201 = vset.pattern.permute.xlu0 %v229_v2  ;;  %v112_v3 = vld [vmem:[%s329_s1 + $0x18] sm:$0xff] }
   0x2   :  { %125 = vperm.xlu1 %202, %v111_v0   ;;  %115 = vperm.xlu0 %201, %v109_v1   ;;  %v110_v4 = vld [vmem:[%s329_s1 + $0x8] sm:$0xff] }
   0x3   :  { %8 = vsyncpa [#allocation3], 0  ;;  %v142_v5 = vld [vmem:[%s330_s2 + $0x8] sm:$0xff]  ;;  %v141_v6 = vld [vmem:[%s330_s2] sm:$0xff]  ;;  %vm23_vm0 = vcmask 523264  }
   0x4   :  { %v144_v7 = vld [vmem:[%s330_s2 + $0x18] sm:$0xff]  ;;  %v15_v8 = vld [vmem:[%s328_s0] sm:$0xff]  ;;  %v16_v9 = vld [vmem:[%s328_s0 + $0x8] sm:$0xff] }
   0x5   :  { %v143_v10 = vld [vmem:[%s330_s2 + $0x10] sm:$0xff]  ;;  %v19_v11 = vld [vmem:[%s328_s0 + $0x20] sm:$0xff]  ;;  %v20_v12 = vld [vmem:[%s328_s0 + $0x28] sm:$0xff]  ;;  %v24_v13 = vsel %vm23_vm0, %v15_v8, 0.0  ;;  %v25_v14 = vsel %vm23_vm0, %v16_v9, 0.0 }
   0x6   :  { %130 = vperm.xlu1 %202, %v112_v3   ;;  %120 = vperm.xlu0 %201, %v110_v4   ;;  %v17_v15 = vld [vmem:[%s328_s0 + $0x10] sm:$0xff]  ;;  %v37_v16 = vsel %vm23_vm0, %v19_v11, 0.0  ;;  %v38_v17 = vsel %vm23_vm0, %v20_v12, 0.0  ;;  %v26_v19 = vadd.f32 %v25_v14, %v24_v13  ;;  %v18_v22 = vld [vmem:[%s328_s0 + $0x18] sm:$0xff] }
   0x7   :  { %v21_v18 = vld [vmem:[%s328_s0 + $0x30] sm:$0xff]  ;;  %v27_v20 = vsel %vm23_vm0, %v17_v15, 0.0  ;;  %v39_v21 = vadd.f32 %v38_v17, %v37_v16  ;;  %v22_v24 = vld [vmem:[%s328_s0 + $0x38] sm:$0xff]  ;;  %v29_v26 = vsel %vm23_vm0, %v18_v22, 0.0  ;;  %s230_s0 = smov [#allocation2]  }
   0x8   :  { %v40_v23 = vsel %vm23_vm0, %v21_v18, 0.0  ;;  %v28_v25 = vadd.f32 %v27_v20, %v26_v19  ;;  %v42_v28 = vsel %vm23_vm0, %v22_v24, 0.0  ;;  %s186_s15 = sshll.u32 %s230_s0, 4  ;;  %s187_s15 = int_to_ptr.vmem [resolvable:$true] %s186_s15 }
   0x9   :  { %v41_v27 = vadd.f32 %v40_v23, %v39_v21  ;;  %s207_s16 = scalar_lea.vmem %s187_s15, 1024  ;;  %p212_p1 = scmp.lt.s32.totalorder %s187_s15, %s187_s15 }
   0xa   :  { %152 = vperm.xlu1 %202, %v142_v5   ;;  %147 = vperm.xlu0 %201, %v141_v6   ;;  %v30_v29 = vadd.f32 %v29_v26, %v28_v25  ;;  %p208_p0 = scmp.ne.s32.totalorder %s187_s15, %s207_s16  ;;  %p213_p2 = scmp.lt.s32.totalorder %s207_s16, %s207_s16 }
   0xb   :  { %v43_v30 = vadd.f32 %v42_v28, %v41_v27 }
   0xc   :  { %v31_v31 = vrot.slane %v30_v29, 4  ;;  %p214_p3 = por %p213_p2, %p212_p1 }
   0xd   :  { %v44_v32 = vrot.slane %v43_v30, 4 }
   0xe   :  { %162 = vperm.xlu1 %202, %v144_v7   ;;  %157 = vperm.xlu0 %201, %v143_v10   ;;  %v32_v33 = vadd.f32 %v31_v31, %v30_v29  ;;  %p215_p4 = pnand %p214_p3, %p208_p0 }
   0xf   :  { %v45_v34 = vadd.f32 %v44_v32, %v43_v30 }
  0x10   :  { %v33_v35 = vrot.slane %v32_v33, 2 }
  0x11   :  { %v46_v36 = vrot.slane %v45_v34, 2 }
  0x12   :  { %v34_v37 = vadd.f32 %v33_v35, %v32_v33 }
  0x13   :  { %v47_v38 = vadd.f32 %v46_v36, %v45_v34 }
  0x14   :  { %v35_v39 = vrot.slane %v34_v37, 1 }
  0x15   :  { %v48_v40 = vrot.slane %v47_v38, 1 }
  0x16   :  { %v36_v41 = vadd.f32 %v35_v39, %v34_v37 }
  0x17   :  { %v49_v42 = vadd.f32 %v48_v40, %v47_v38 }
  0x18   :  { %v51_v43 = vmul.f32 0.03125, %v36_v41 }
  0x19   :  { %v52_v44 = vmul.f32 0.03125, %v49_v42 }
  0x1a   :  { %v53_v45 = vsub.f32 %v15_v8, %v51_v43  ;;  %v54_v46 = vsub.f32 %v16_v9, %v51_v43  ;;  %v55_v49 = vsub.f32 %v17_v15, %v51_v43  ;;  %v56_v55 = vsub.f32 %v18_v22, %v51_v43 }
  0x1b   :  { %v57_v47 = vsub.f32 %v19_v11, %v52_v44  ;;  %v58_v48 = vsub.f32 %v20_v12, %v52_v44  ;;  %v59_v52 = vsub.f32 %v21_v18, %v52_v44  ;;  %v60_v59 = vsub.f32 %v22_v24, %v52_v44 }
  0x1c   :  { %v61_v50 = vmul.f32 %v53_v45, %v53_v45  ;;  %v62_v51 = vmul.f32 %v54_v46, %v54_v46  ;;  %v63_v56 = vmul.f32 %v55_v49, %v55_v49  ;;  %v64_v0 = vmul.f32 %v56_v55, %v56_v55 }
  0x1d   :  { %v65_v53 = vmul.f32 %v57_v47, %v57_v47  ;;  %v66_v54 = vmul.f32 %v58_v48, %v58_v48  ;;  %v67_v60 = vmul.f32 %v59_v52, %v59_v52  ;;  %v68_v3 = vmul.f32 %v60_v59, %v60_v59 }
  0x1e   :  { %v69_v57 = vsel %vm23_vm0, %v61_v50, 0.0  ;;  %v70_v58 = vsel %vm23_vm0, %v62_v51, 0.0  ;;  %v72_v1 = vsel %vm23_vm0, %v63_v56, 0.0  ;;  %v74_v6 = vsel %vm23_vm0, %v64_v0, 0.0 }
  0x1f   :  { %v82_v61 = vsel %vm23_vm0, %v65_v53, 0.0  ;;  %v83_v62 = vsel %vm23_vm0, %v66_v54, 0.0  ;;  %v71_v63 = vadd.f32 %v70_v58, %v69_v57  ;;  %v85_v4 = vsel %vm23_vm0, %v67_v60, 0.0 }
  0x20   :  { %v84_v2 = vadd.f32 %v83_v62, %v82_v61  ;;  %v87_v8 = vsel %vm23_vm0, %v68_v3, 0.0 }
  0x21   :  { %v73_v5 = vadd.f32 %v72_v1, %v71_v63 }
  0x22   :  { %v86_v7 = vadd.f32 %v85_v4, %v84_v2 }
  0x23   :  { %v75_v9 = vadd.f32 %v74_v6, %v73_v5 }
  0x24   :  { %v88_v10 = vadd.f32 %v87_v8, %v86_v7 }
  0x25   :  { %v76_v11 = vrot.slane %v75_v9, 4 }
  0x26   :  { %v89_v12 = vrot.slane %v88_v10, 4 }
  0x27   :  { %v77_v13 = vadd.f32 %v76_v11, %v75_v9 }
  0x28   :  { %v90_v14 = vadd.f32 %v89_v12, %v88_v10 }
  0x29   :  { %v78_v15 = vrot.slane %v77_v13, 2 }
  0x2a   :  { %v91_v16 = vrot.slane %v90_v14, 2 }
  0x2b   :  { %v79_v17 = vadd.f32 %v78_v15, %v77_v13 }
  0x2c   :  { %v92_v18 = vadd.f32 %v91_v16, %v90_v14 }
  0x2d   :  { %v80_v19 = vrot.slane %v79_v17, 1 }
  0x2e   :  { %v93_v20 = vrot.slane %v92_v18, 1 }
  0x2f   :  { %v81_v21 = vadd.f32 %v80_v19, %v79_v17 }
  0x30   :  { %v94_v22 = vadd.f32 %v93_v20, %v92_v18 }
  0x31   :  { %v95_v23 = vmul.f32 0.03125, %v81_v21 }
  0x32   :  { %v96_v24 = vmul.f32 0.03125, %v94_v22 }
  0x33   :  { %v97_v25 = vadd.f32 1e-06, %v95_v23 }
  0x34   :  { %v98_v26 = vadd.f32 1e-06, %v96_v24 }
  0x35   :  { %203 = vrsqrt.f32 %v97_v25 }
  0x36   :  { %205 = vrsqrt.f32 %v98_v26 }
  0x42   :  { %v204_v27 = vpop.eup %203 }
  0x43   :  { %v206_v28 = vpop.eup %205  ;;  %v101_v31 = vmul.f32 %v204_v27, %v53_v45  ;;  %v102_v33 = vmul.f32 %v204_v27, %v54_v46  ;;  %v103_v37 = vmul.f32 %v204_v27, %v55_v49  ;;  %v104_v39 = vmul.f32 %v204_v27, %v56_v55 }
  0x44   :  { %v105_v32 = vmul.f32 %v206_v28, %v57_v47  ;;  %v106_v34 = vmul.f32 %v206_v28, %v58_v48  ;;  %v107_v38 = vmul.f32 %v206_v28, %v59_v52  ;;  %v108_v40 = vmul.f32 %v206_v28, %v60_v59 }
  0x7d   :  { %v126_v29 = vpop.permute.xlu1 %125  ;;  %v116_v30 = vpop.permute.xlu0 %115 }
  0x7e   :  { %v133_v41 = vmul.f32 %v116_v30, %v101_v31  ;;  %v137_v42 = vmul.f32 %v116_v30, %v105_v32  ;;  %v135_v45 = vmul.f32 %v126_v29, %v103_v37  ;;  %v139_v46 = vmul.f32 %v126_v29, %v107_v38 }
  0x81   :  { %v131_v35 = vpop.permute.xlu1 %130  ;;  %v121_v36 = vpop.permute.xlu0 %120 }
  0x82   :  { %v134_v43 = vmul.f32 %v121_v36, %v102_v33  ;;  %v138_v44 = vmul.f32 %v121_v36, %v106_v34  ;;  %v136_v47 = vmul.f32 %v131_v35, %v104_v39  ;;  %v140_v48 = vmul.f32 %v131_v35, %v108_v40 }
  0x85   :  { %v153_v50 = vpop.permute.xlu1 %152  ;;  %v148_v51 = vpop.permute.xlu0 %147 }
  0x86   :  { %v166_v53 = vadd.f32 %v153_v50, %v134_v43  ;;  %v170_v54 = vadd.f32 %v153_v50, %v138_v44  ;;  %v165_v56 = vadd.f32 %v148_v51, %v133_v41  ;;  %v169_v57 = vadd.f32 %v148_v51, %v137_v42 }
  0x88   :  { %174 = vst.msk [vmem:[#allocation2 + $0x8] sm:$0xff] %vm23_vm0, %v166_v53  ;;  %178 = vst.msk [vmem:[#allocation2 + $0x28] sm:$0xff] %vm23_vm0, %v170_v54 }
  0x89   :  { %173 = vst.msk [vmem:[#allocation2] sm:$0xff] %vm23_vm0, %v165_v56  ;;  %177 = vst.msk [vmem:[#allocation2 + $0x20] sm:$0xff] %vm23_vm0, %v169_v57  ;;  %v163_v49 = vpop.permute.xlu1 %162  ;;  %v158_v52 = vpop.permute.xlu0 %157 }
  0x8a   :  { %v168_v55 = vadd.f32 %v163_v49, %v136_v47  ;;  %v172_v58 = vadd.f32 %v163_v49, %v140_v48  ;;  %v167_v59 = vadd.f32 %v158_v52, %v135_v45  ;;  %v171_v60 = vadd.f32 %v158_v52, %v139_v46 }
  0x8c   :  { %176 = vst.msk [vmem:[#allocation2 + $0x18] sm:$0xff] %vm23_vm0, %v168_v55  ;;  %180 = vst.msk [vmem:[#allocation2 + $0x38] sm:$0xff] %vm23_vm0, %v172_v58 }
  0x8d   :  { %175 = vst.msk [vmem:[#allocation2 + $0x10] sm:$0xff] %vm23_vm0, %v167_v59  ;;  %179 = vst.msk [vmem:[#allocation2 + $0x30] sm:$0xff] %vm23_vm0, %v171_v60 }
  0x8e   :  { %218 = shalt.err (!%p215_p4)
}
  0x8f   :  { %s231_s17 = smov 128   ;;  %s232_s18 = smov 8  }
  0x90   :  { %192 = dma.vmem_to_hbm [thread:$0]  %s187_s15, 1024, %s331_s3, [#allocation3], %s231_s17, %s231_s17, %s232_s18  }
  0x91   :  { %227 = dma.done.wait [#allocation3], 1024  }
  0x92   :  { %228 = vsyncadd [#allocation3], 4294966272 }
  0x93   :  { %196 = vsyncpa [#allocation3], 1 }

</bundles_post_ra>
